<compile_context>
chip_gen: v7x
topology: tpu7x:2x2x1
jax: 0.10.0
libtpu: 0.0.40
codegen_flags: <defaults>
</compile_context>

<pallas_src>
import jax
import jax.numpy as jnp
from jax.experimental import pallas as pl
from jax.experimental.pallas import tpu as pltpu


def _mlp_f32(z_ref, w1_ref, b1_ref, w2_ref, b2_ref):
    """model(z): Linear(Z,H) -> ReLU -> Linear(H,D), all f32 (exact parity)."""
    h = jnp.dot(z_ref[...], w1_ref[...], preferred_element_type=jnp.float32)
    h = jnp.maximum(h + b1_ref[...], 0.0)
    return jnp.dot(h, w2_ref[...], preferred_element_type=jnp.float32) + b2_ref[...]


def _scaled_normal(sigma, shape):
    """sigma * N(0,1) of `shape` from the in-kernel TPU PRNG (seed already set)."""
    if hasattr(pltpu, "stateful_normal"):
        return sigma * pltpu.stateful_normal(shape, jnp.float32)
    # Box-Muller fallback, dual-branch: uniforms for half the rows, use both
    # the cos and sin branch (transcendentals land on the otherwise idle EUP).
    rows, cols = shape
    half = rows // 2
    bits1 = pltpu.bitcast(pltpu.prng_random_bits((half, cols)), jnp.int32)
    bits2 = pltpu.bitcast(pltpu.prng_random_bits((half, cols)), jnp.int32)
    u1 = (bits1 & jnp.int32(0x7FFFFF)).astype(jnp.float32) * (1.0 / (1 << 23))
    u2 = (bits2 & jnp.int32(0x7FFFFF)).astype(jnp.float32) * (1.0 / (1 << 23))
    u1 = jnp.maximum(u1, 1e-7)                       # avoid log(0)
    r = sigma * jnp.sqrt(-2.0 * jnp.log(u1))         # sigma folded in pre-duplication
    theta = (2.0 * jnp.pi) * u2
    return jnp.concatenate([r * jnp.cos(theta), r * jnp.sin(theta)], axis=0)


def _decoder_kernel_prng(seed_ref,        # SMEM (1,) int32   base PRNG seed
                         sigma_ref,       # SMEM (1,) f32     exp(log_sigma)
                         z_ref,           # VMEM (TB, Z) f32  latent tile (streamed)
                         w1_ref, b1_ref,  # VMEM (Z, H), (1, H) f32  (resident)
                         w2_ref, b2_ref,  # VMEM (H, D), (1, D) f32  (resident)
                         out_ref):        # VMEM (TB, D) f32
    # Strided per-tile seed -> decorrelated noise across tiles, deterministic
    # regardless of which TensorCore runs the tile.
    pltpu.prng_seed(seed_ref[0] + pl.program_id(0) * jnp.int32(1000003))
    x_hat = _mlp_f32(z_ref, w1_ref, b1_ref, w2_ref, b2_ref)
    out_ref[...] = x_hat + _scaled_normal(sigma_ref[0], x_hat.shape)


def _decoder_kernel_eps(sigma_ref,        # SMEM (1,) f32
                        z_ref,            # VMEM (TB, Z) f32
                        eps_ref,          # VMEM (TB, D) f32 (streamed, XLA-generated)
                        w1_ref, b1_ref, w2_ref, b2_ref,
                        out_ref):
    # PRNG-free path for non-TPU backends / interpret mode.
    x_hat = _mlp_f32(z_ref, w1_ref, b1_ref, w2_ref, b2_ref)
    out_ref[...] = x_hat + sigma_ref[0] * eps_ref[...]


def gaussian_decoder_forward(log_sigma, seed, z, w1, b1, w2, b2, *, tb=4096):
    """forward(z) = MLP(z) + exp(log_sigma) * N(0, 1)   (all rows of z)."""
    B, Z = z.shape
    H = w1.shape[1]
    D = w2.shape[1]

    # --- batch tile: multiple of 8 (f32 sublane), large by default (HBM-bound),
    # and capped at round8(ceil(B/2)) so >= 2 tiles exist for the parallel axis
    # (both v7x TensorCores; no-op on single-TC v5e/v6e).
    tb = max(8, min(int(tb), ((B + 7) // 8) * 8))
    tb = (tb // 8) * 8
    if B >= 16:
        half = ((((B + 1) // 2) + 7) // 8) * 8
        tb = min(tb, half)
    num_tiles = -(-B // tb)
    b_pad = num_tiles * tb
    if b_pad != B:
        z = jnp.pad(z, ((0, b_pad - B), (0, 0)))

    sigma = jnp.exp(jnp.asarray(log_sigma, jnp.float32)).reshape((1,))
    z = z.astype(jnp.float32)
    w1 = jnp.asarray(w1, jnp.float32)
    w2 = jnp.asarray(w2, jnp.float32)
    b1 = jnp.asarray(b1, jnp.float32).reshape((1, H))
    b2 = jnp.asarray(b2, jnp.float32).reshape((1, D))

    use_inkernel_prng = jax.default_backend() == "tpu"

    # Scoped-VMEM: z + out tiles (plus eps tile on the streamed path),
    # double-buffered, plus the resident weights.  Raise the limit only when
    # large tiles would brush the 16 MiB v5e default.
    per_tile = tb * Z * 4 + tb * D * 4 + (0 if use_inkernel_prng else tb * D * 4)
    est_vmem = 2 * per_tile + (Z * H + H + H * D + D) * 4
    compiler_kwargs = dict(dimension_semantics=("parallel",))
    if est_vmem > (14 << 20):
        compiler_kwargs["vmem_limit_bytes"] = min(est_vmem + (4 << 20), 64 << 20)

    weight_specs = [
        pl.BlockSpec((Z, H), lambda i: (0, 0)),      # w1 (VMEM-resident)
        pl.BlockSpec((1, H), lambda i: (0, 0)),      # b1 (VMEM-resident)
        pl.BlockSpec((H, D), lambda i: (0, 0)),      # w2 (VMEM-resident)
        pl.BlockSpec((1, D), lambda i: (0, 0)),      # b2 (VMEM-resident)
    ]
    out_spec = pl.BlockSpec((tb, D), lambda i: (i, 0))   # lane-dense f32 output
    out_shape = jax.ShapeDtypeStruct((b_pad, D), jnp.float32)

    if use_inkernel_prng:
        seed_arr = jnp.asarray(seed, jnp.int32).reshape((1,))
        out = pl.pallas_call(
            _decoder_kernel_prng,
            out_shape=out_shape,
            grid=(num_tiles,),
            in_specs=[
                pl.BlockSpec(memory_space=pltpu.SMEM),      # seed
                pl.BlockSpec(memory_space=pltpu.SMEM),      # sigma
                pl.BlockSpec((tb, Z), lambda i: (i, 0)),    # z (streamed per tile)
            ] + weight_specs,
            out_specs=out_spec,
            compiler_params=pltpu.CompilerParams(**compiler_kwargs),
        )(seed_arr, sigma, z, w1, b1, w2, b2)
    else:
        # pltpu.prng_* has no CPU/interpret lowering: generate eps with XLA and
        # stream it (correctness identical; only used off-TPU).
        eps = jax.random.normal(jax.random.PRNGKey(int(seed)), (b_pad, D), jnp.float32)
        out = pl.pallas_call(
            _decoder_kernel_eps,
            out_shape=out_shape,
            grid=(num_tiles,),
            in_specs=[
                pl.BlockSpec(memory_space=pltpu.SMEM),      # sigma
                pl.BlockSpec((tb, Z), lambda i: (i, 0)),    # z   (streamed)
                pl.BlockSpec((tb, D), lambda i: (i, 0)),    # eps (streamed)
            ] + weight_specs,
            out_specs=out_spec,
            compiler_params=pltpu.CompilerParams(**compiler_kwargs),
        )(sigma, z, eps, w1, b1, w2, b2)

    return out[:B]


if __name__ == "__main__":
    # Small shapes consistent with the module: latent Z=32, hidden H=64,
    # output D=128, batch B=256 (tile cap -> 2 grid tiles).
    B, Z, H, D = 256, 32, 64, 128

    key = jax.random.PRNGKey(0)
    k_z, k_w1, k_b1, k_w2, k_b2 = jax.random.split(key, 5)

    w1 = jax.random.normal(k_w1, (Z, H), dtype=jnp.float32) * 0.1
    b1 = jax.random.normal(k_b1, (1, H), dtype=jnp.float32) * 0.01
    w2 = jax.random.normal(k_w2, (H, D), dtype=jnp.float32) * 0.1
    b2 = jax.random.normal(k_b2, (1, D), dtype=jnp.float32) * 0.01
    z = jax.random.normal(k_z, (B, Z), dtype=jnp.float32)

    # Pure-JAX f32 reference of the deterministic decoder body.
    x_hat_ref = jnp.maximum(z @ w1 + b1, 0.0) @ w2 + b2

    # 1) sigma ~ 0: output must equal model(z) (f32 matmuls -> tight tolerance).
    out_det = gaussian_decoder_forward(jnp.float32(-30.0), 1234, z, w1, b1, w2, b2)
    out_det = jax.block_until_ready(out_det)
    assert out_det.shape == (B, D)
    max_err = float(jnp.max(jnp.abs(out_det - x_hat_ref)))
    assert max_err < 1e-4, max_err

    # 2) log_sigma = 0 (the nn.Parameter(0.0) init): residual noise over
    #    B*D = 32768 samples must look ~N(0, 1).
    out = gaussian_decoder_forward(jnp.float32(0.0), 1234, z, w1, b1, w2, b2)
    out = jax.block_until_ready(out)
    noise = out - x_hat_ref
    noise_mean = float(jnp.mean(noise))
    noise_std = float(jnp.std(noise))
    assert abs(noise_mean) < 0.05, noise_mean
    assert 0.9 < noise_std < 1.1, noise_std

    # TODO(synk): log_prob() not implemented (only forward() was requested).
    print("KERNEL_OK")
</pallas_src>

<mosaic_0001>
module attributes {stable_mosaic.version = 11 : i64} {
  func.func @_decoder_kernel_eps(%arg0: i32, %arg1: memref<1xf32, #tpu.memory_space<smem>>, %arg2: memref<128x32xf32, #tpu.memory_space<vmem>>, %arg3: memref<128x128xf32, #tpu.memory_space<vmem>>, %arg4: memref<32x64xf32, #tpu.memory_space<vmem>>, %arg5: memref<1x64xf32, #tpu.memory_space<vmem>>, %arg6: memref<64x128xf32, #tpu.memory_space<vmem>>, %arg7: memref<1x128xf32, #tpu.memory_space<vmem>>, %arg8: memref<128x128xf32, #tpu.memory_space<vmem>>) attributes {dimension_semantics = [#tpu.dimension_semantics<parallel>], iteration_bounds = array<i64: 2>, scalar_prefetch = 0 : i64, scratch_operands = 0 : i64, tpu.core_type = #tpu.core_type<tc>, window_params = [{transform_indices = @transform_0, window_bounds = array<i64: 1>}, {transform_indices = @transform_1, window_bounds = array<i64: 128, 32>}, {transform_indices = @transform_2, window_bounds = array<i64: 128, 128>}, {pipeline_mode = #tpu.pipeline_mode<synchronous>, transform_indices = @transform_3, window_bounds = array<i64: 32, 64>}, {pipeline_mode = #tpu.pipeline_mode<synchronous>, transform_indices = @transform_4, window_bounds = array<i64: 1, 64>}, {pipeline_mode = #tpu.pipeline_mode<synchronous>, transform_indices = @transform_5, window_bounds = array<i64: 64, 128>}, {pipeline_mode = #tpu.pipeline_mode<synchronous>, transform_indices = @transform_6, window_bounds = array<i64: 1, 128>}, {transform_indices = @transform_7, window_bounds = array<i64: 128, 128>}]} {
    %c0 = arith.constant 0 : index
    %c0_0 = arith.constant 0 : index
    %0 = vector.load %arg2[%c0, %c0_0] : memref<128x32xf32, #tpu.memory_space<vmem>>, vector<128x32xf32>
    %c0_1 = arith.constant 0 : index
    %c0_2 = arith.constant 0 : index
    %1 = vector.load %arg4[%c0_1, %c0_2] : memref<32x64xf32, #tpu.memory_space<vmem>>, vector<32x64xf32>
    %cst = arith.constant dense<0.000000e+00> : vector<128x64xf32>
    %2 = tpu.matmul %0, %1, %cst {dimension_numbers = #tpu.dot_dimension_numbers<[1], [0], [0], [1], [0, 0, 1, 1], [], []>} : vector<128x32xf32>, vector<32x64xf32>, vector<128x64xf32> -> vector<128x64xf32>
    %c0_3 = arith.constant 0 : index
    %c0_4 = arith.constant 0 : index
    %3 = vector.load %arg5[%c0_3, %c0_4] : memref<1x64xf32, #tpu.memory_space<vmem>>, vector<1x64xf32>
    %4 = vector.broadcast %3 : vector<1x64xf32> to vector<128x64xf32>
    %5 = arith.addf %2, %4 : vector<128x64xf32>
    %cst_5 = arith.constant 0.000000e+00 : f32
    %6 = vector.broadcast %cst_5 : f32 to vector<128x64xf32>
    %7 = arith.maximumf %5, %6 : vector<128x64xf32>
    %c0_6 = arith.constant 0 : index
    %c0_7 = arith.constant 0 : index
    %8 = vector.load %arg6[%c0_6, %c0_7] : memref<64x128xf32, #tpu.memory_space<vmem>>, vector<64x128xf32>
    %cst_8 = arith.constant dense<0.000000e+00> : vector<128x128xf32>
    %9 = tpu.matmul %7, %8, %cst_8 {dimension_numbers = #tpu.dot_dimension_numbers<[1], [0], [0], [1], [0, 0, 1, 1], [], []>} : vector<128x64xf32>, vector<64x128xf32>, vector<128x128xf32> -> vector<128x128xf32>
    %c0_9 = arith.constant 0 : index
    %c0_10 = arith.constant 0 : index
    %10 = vector.load %arg7[%c0_9, %c0_10] : memref<1x128xf32, #tpu.memory_space<vmem>>, vector<1x128xf32>
    %11 = vector.broadcast %10 : vector<1x128xf32> to vector<128x128xf32>
    %12 = arith.addf %9, %11 : vector<128x128xf32>
    %c0_11 = arith.constant 0 : index
    %13 = memref.load %arg1[%c0_11] : memref<1xf32, #tpu.memory_space<smem>>
    %c0_12 = arith.constant 0 : index
    %c0_13 = arith.constant 0 : index
    %14 = vector.load %arg3[%c0_12, %c0_13] : memref<128x128xf32, #tpu.memory_space<vmem>>, vector<128x128xf32>
    %15 = vector.broadcast %13 : f32 to vector<128x128xf32>
    %16 = arith.mulf %15, %14 : vector<128x128xf32>
    %17 = arith.addf %12, %16 : vector<128x128xf32>
    %c0_14 = arith.constant 0 : index
    %c0_15 = arith.constant 0 : index
    %18 = vector.load %arg8[%c0_14, %c0_15] : memref<128x128xf32, #tpu.memory_space<vmem>>, vector<128x128xf32>
    tpu.vector_store %arg8[%c0_14, %c0_15], %17 {strides = array<i32>} : memref<128x128xf32, #tpu.memory_space<vmem>>, vector<128x128xf32>,
    return
  }
  func.func @transform_0(%arg0: i32) -> i32 {
    %c0_i32 = arith.constant 0 : i32
    %c0_i32_0 = arith.constant 0 : i32
    return %c0_i32 : i32
  }
  func.func @transform_1(%arg0: i32) -> (i32, i32) {
    %c0_i32 = arith.constant 0 : i32
    %c0_i32_0 = arith.constant 0 : i32
    return %arg0, %c0_i32 : i32, i32
  }
  func.func @transform_2(%arg0: i32) -> (i32, i32) {
    %c0_i32 = arith.constant 0 : i32
    %c0_i32_0 = arith.constant 0 : i32
    return %arg0, %c0_i32 : i32, i32
  }
  func.func @transform_3(%arg0: i32) -> (i32, i32) {
    %c0_i32 = arith.constant 0 : i32
    %c0_i32_0 = arith.constant 0 : i32
    %c0_i32_1 = arith.constant 0 : i32
    return %c0_i32, %c0_i32_0 : i32, i32
  }
  func.func @transform_4(%arg0: i32) -> (i32, i32) {
    %c0_i32 = arith.constant 0 : i32
    %c0_i32_0 = arith.constant 0 : i32
    %c0_i32_1 = arith.constant 0 : i32
    return %c0_i32, %c0_i32_0 : i32, i32
  }
  func.func @transform_5(%arg0: i32) -> (i32, i32) {
    %c0_i32 = arith.constant 0 : i32
    %c0_i32_0 = arith.constant 0 : i32
    %c0_i32_1 = arith.constant 0 : i32
    return %c0_i32, %c0_i32_0 : i32, i32
  }
  func.func @transform_6(%arg0: i32) -> (i32, i32) {
    %c0_i32 = arith.constant 0 : i32
    %c0_i32_0 = arith.constant 0 : i32
    %c0_i32_1 = arith.constant 0 : i32
    return %c0_i32, %c0_i32_0 : i32, i32
  }
  func.func @transform_7(%arg0: i32) -> (i32, i32) {
    %c0_i32 = arith.constant 0 : i32
    %c0_i32_0 = arith.constant 0 : i32
    return %arg0, %c0_i32 : i32, i32
  }
}

</mosaic_0001>

<bundles_post_ra>
// kernel: tpu_custom_call.1
= control target key start
LH: loop header
LB: loop body
LE: loop exit
PB: predicated region body
PF: predicated region fallthrough
CT: control target
= control target key end

     0   :  { %s1632_s0 = inlined_call_operand.<no memory space> [shape: f32[1], index: 0, kind: input, shape index: {}]   ;;  %s1633_s1 = inlined_call_operand.vmem [shape: f32[256,32], index: 1, kind: input, shape index: {}]   ;;  %s1634_s2 = inlined_call_operand.vmem [shape: f32[256,128], index: 2, kind: input, shape index: {}]   ;;  %s1635_s3 = inlined_call_operand.hbm [shape: f32[32,64], index: 3, kind: input, shape index: {}]   ;;  %s1636_s4 = inlined_call_operand.vmem [shape: f32[1,64], index: 4, kind: input, shape index: {}]   ;;  %s1637_s5 = inlined_call_operand.vmem [shape: f32[64,128], index: 5, kind: input, shape index: {}]   ;;  %s1638_s6 = inlined_call_operand.vmem [shape: f32[1,128], index: 6, kind: input, shape index: {}]   ;;  %s1639_s7 = inlined_call_operand.hbm [shape: f32[256,128], index: 7, kind: output, shape index: {}]  }
   0x1   :  { %12 = sst [smem:[#allocation2]] %s1632_s0 }
   0x2   :  { %13 = vsyncpa [#allocation4], 0 }
   0x3   :  { %14 = vsyncpa [#allocation5], 0 }
   0x4   :  { %16 = vsyncpa [#allocation5 + $0x1], 0  ;;  %s1328_s26 = smov 0   ;;  %s1330_s27 = smov 0  }
   0x5   :  { %s1332_s28 = smov 0   ;;  %s1334_s29 = smov 0  }
   0x6 LB: > { %s1349_s0 = sadd.s32 4294967295, %s1277_s29   ;;  %s930_s30 = sadd.s32 4294967294, %s1277_s29   ;;  %s1277_s29 = sphi %s1334_s29, %s1655_s29   ;;  %s1273_s28 = sphi %s1332_s28, %s1654_s28   ;;  %s1269_s27 = sphi %s1330_s27, %s1653_s27   ;;  %s1265_s26 = sphi %s1328_s26, %s1652_s26  }
   0x7   : > { %s1353_s8 = sadd.s32 1, %s1277_s29   ;;  %s186_s9 = sadd.s32 1, %s1273_s28 }
   0x8   : > { %s183_s10 = ssub.s32 %s1277_s29, %s1353_s8  ;;  %p196_p0 = scmp.ne.s32.totalorder %s1273_s28, %s1269_s27 }
   0x9   : > { %p184_p1 = scmp.eq.s32.totalorder %s183_s10, 0  ;;  %p197_p2 = scmp.eq.s32.totalorder %s1349_s0, 1 }
   0xa   : > { %p202_p3 = scmp.ne.s32.totalorder %s1269_s27, %s1265_s26  ;;  %p203_p4 = scmp.eq.s32.totalorder %s930_s30, 1 }
   0xb   : > { %s1364_s11 = scalar_select %p184_p1, %s1273_s28, %s186_s9  }
   0xc   : > { %p1366_p5 = por %p197_p2, %p196_p0  ;;  %p1370_p6 = por %p203_p4, %p202_p3 }
   0xd   : > { %p931_p7 = scmp.ge.s32.totalorder %s1277_s29, 1  ;;  %p210_p8 = scmp.lt.s32.totalorder %s1277_s29, 3 }
   0xe   : > { %s1643_s12 = scalar_select %p1366_p5, 1, 0 }
   0xf   : > { %s1644_s13 = scalar_select %p1370_p6, 1, 0 }
  0x10   : > { %p1640_p9 = scmp.eq.s32.totalorder %s1349_s0, 0  ;;  %p1377_p10 = pnand %p931_p7, %p210_p8 }
  0x11   : > { %s1279_s15 = smov [#allocation3]   ;;  %s1183_s20 = scalar_lea.hbm %s1635_s3, 512 }
  0x12   : > { %s1645_s14 = scalar_select %p1377_p10, 1, 0 }
  0x13   : > { %s225_s16 = sshll.u32 %s1279_s15, 4  ;;  %p1135_p11 = pneg %p1377_p10  ;;  %s226_s16 = int_to_ptr.vmem [resolvable:$true] %s225_s16 }
  0x14   : > { %p1184_p13 = scmp.ne.s32.totalorder %s1635_s3, %s1183_s20  ;;  %p1190_p3 = scmp.lt.u32.totalorder %s1183_s20, %s1635_s3 }
  0x15   : > { %p1385_p12 = pnand %p1640_p9, %p1135_p11 }
  0x17   : > { %p1185_p0 = pneg %p1385_p12 }
  0x19   : > { %p1186_p1 = pnand %p1185_p0, %p1184_p13 }
  0x1b   : > { %p1187_p2 = pneg %p1186_p1 }
  0x1d   : > { %p1192_p4 = pnand %p1190_p3, %p1187_p2 }
  0x1f   : > { %1195 = shalt.err (!%p1192_p4)
}
  0x20   : > { %s1196_s25 = scalar_lea.vmem %s226_s16, 512  ;;  %p1204_p9 = scmp.lt.s32.totalorder %s226_s16, %s226_s16 }
  0x21   : > { %p1197_p7 = scmp.ne.s32.totalorder %s226_s16, %s1196_s25  ;;  %p1205_p6 = scmp.lt.s32.totalorder %s1196_s25, %s1196_s25 }
  0x23   : > { %p1199_p8 = pnand %p1197_p7, %p1185_p0  ;;  %p1206_p5 = por %p1205_p6, %p1204_p9 }
  0x25   : > { %p1200_p11 = pneg %p1199_p8 }
  0x27   : > { %p1207_p10 = pnand %p1206_p5, %p1200_p11 }
  0x29   : > { %1210 = shalt.err (!%p1207_p10)
}
  0x2a   : > { %s1280_s30 = smov 128   ;;  %s1281_s9 = smov 8  }
  0x2b   : > { %1138 = dma.hbm_to_vmem [thread:$0]  (!%p1385_p12), %s1635_s3, 512, %s226_s16, [#allocation4], %s1280_s30, %s1280_s30, %s1281_s9  }
  0x2c   : > { %p1647_p13 = scmp.ne.s32.totalorder %s1645_s14, 0 }
  0x2d   : > { %p1648_p1 = scmp.eq.s32.totalorder (!%p1647_p13), %s1349_s0, 0 }
  0x2e   : > { %268 = sbr.rel (%p1647_p13) target bundleno = 543 (0x21f), region = 48 }
  0x35   : > { %1256 = dma.done.wait (%p1648_p1), [#allocation4], 512   ;;  %p1649_p0 = pmov %p1648_p1 }
  0x36   : > { %s937_s18 = sshll.u32 %s1349_s0, 4  ;;  %vm345_vm0 = vcmask 261120   ;;  %v334_v0 = vld [vmem:[#allocation3] sm:$0xff]  ;;  %v335_v1 = vld [vmem:[#allocation3 + $0x8] sm:$0xff]  ;;  %v336_v2 = vld [vmem:[#allocation3 + $0x10] sm:$0xff]  ;;  %vm570_vm1 = vcmask 523264  }
  0x37   : > { %1258 = vsyncadd (%p1649_p0), [#allocation4], 4294966784  ;;  %p306_p5 = scmp.lt.s32.totalorder %s937_s18, 31  ;;  %v1097_v3 = vpack.c.bf16 %v335_v1, %v334_v0  ;;  %v337_v4 = vld [vmem:[#allocation3 + $0x18] sm:$0xff]  ;;  %v555_v7 = vld [vmem:[%s1637_s5] sm:$0xff]  ;;  %s302_s15 = sand.u32 1, %s1269_s27  }
  0x38   : > { %v1101_v6 = vpack.c.bf16 %v337_v4, %v336_v2  ;;  %v556_v8 = vld [vmem:[%s1637_s5 + $0x8] sm:$0xff]  ;;  %v557_v9 = vld [vmem:[%s1637_s5 + $0x10] sm:$0xff]  ;;  %v558_v10 = vld [vmem:[%s1637_s5 + $0x18] sm:$0xff]  ;;  %s980_s20 = sshll.u32 %s1349_s0, 11  ;;  %s1591_s0 = scalar_lea.sflag [#allocation5], %s302_s15 }
  0x39   : > { %s1657_s18 = smov (!%p306_p5, %s937_s18), 31  ;;  %1098 = vmatprep.subr.bf16.mxu0 %v1097_v3  ;;  %v1105_v12 = vpack.c.bf16 %v556_v8, %v555_v7  ;;  %v1109_v14 = vpack.c.bf16 %v558_v10, %v557_v9  ;;  %v559_v15 = vld [vmem:[%s1637_s5 + $0x20] sm:$0xff]  ;;  %v560_v16 = vld [vmem:[%s1637_s5 + $0x28] sm:$0xff]  ;;  %v561_v31 = vld [vmem:[%s1637_s5 + $0x30] sm:$0xff]  ;;  %s1583_s24 = scalar_lea.hbm %s1639_s7, %s980_s20 }
  0x3a   : > { %s938_s17 = sshll.u32 %s1657_s18, 3  ;;  %1100 = vmatpush3.bf16.msra.mxu0 %v1097_v3  ;;  %v1113_v19 = vpack.c.bf16 %v560_v16, %v559_v15  ;;  %v562_v32 = vld [vmem:[%s1637_s5 + $0x38] sm:$0xff]  ;;  %v941_v34 = vld [vmem:[%s1636_s4] ss:$0 sm:$0xff]  ;;  %s936_s18 = sshll.u32 %s302_s15, 7 }
  0x3b   : > { %s1420_s14 = scalar_lea.vmem %s1633_s1, %s938_s17  ;;  %1102 = vmatprep.subr.bf16.mxu0 %v1101_v6  ;;  %1121 = vmatprep.subr.bf16.mxu1 %v1105_v12  ;;  %v1117_v33 = vpack.c.bf16 %v562_v32, %v561_v31  ;;  %s1502_s10 = scalar_lea.vmem %s1634_s2, %s938_s17 }
  0x3c   : > { %v318_v5 = vld [vmem:[%s1420_s14] sm:$0xff]  ;;  %v319_v11 = vld [vmem:[%s1420_s14 + $0x8] sm:$0xff]  ;;  %v320_v13 = vld [vmem:[%s1420_s14 + $0x10] sm:$0xff]  ;;  %1125 = vmatpush3.bf16.msra.mxu1 %v1105_v12  ;;  %s1525_s17 = scalar_lea.vmem [#allocation6], %s936_s18  ;;  %p1650_p9 = scmp.ne.s32.totalorder %s1643_s12, 0 }
  0x3d   : > { %1033 = vmatprep.mubr.msk.f32.mxu0 %vm345_vm0, %v318_v5  ;;  %v321_v17 = vld [vmem:[%s1420_s14 + $0x18] sm:$0xff]  ;;  %v322_v18 = vld [vmem:[%s1420_s14 + $0x20] sm:$0xff]  ;;  %1122 = vmatprep.subr.bf16.mxu1 %v1109_v14  ;;  %v323_v20 = vld [vmem:[%s1420_s14 + $0x28] sm:$0xff]  ;;  %s844_s21 = sshll.u32 %s1525_s17, 4  ;;  %s1585_s21 = int_to_ptr.vmem [resolvable:$true] %s844_s21 }
  0x3e   : > { %1104 = vmatpush3.bf16.msra.mxu0 %v1101_v6  ;;  %v324_v21 = vld [vmem:[%s1420_s14 + $0x30] sm:$0xff]  ;;  %v325_v22 = vld [vmem:[%s1420_s14 + $0x38] sm:$0xff]  ;;  %v326_v23 = vld [vmem:[%s1420_s14 + $0x40] sm:$0xff]  ;;  %s1211_s25 = scalar_lea.vmem %s1585_s21, 2048 }
  0x3f   : > { %1106 = vmatprep.subr.bf16.mxu0 %v1105_v12  ;;  %v327_v24 = vld [vmem:[%s1420_s14 + $0x48] sm:$0xff]  ;;  %v328_v25 = vld [vmem:[%s1420_s14 + $0x50] sm:$0xff]  ;;  %v329_v26 = vld [vmem:[%s1420_s14 + $0x58] sm:$0xff]  ;;  %p1212_p6 = scmp.ne.s32.totalorder %s1585_s21, %s1211_s25 }
  0x40   : > { %1126 = vmatpush3.bf16.msra.mxu1 %v1109_v14  ;;  %v330_v27 = vld [vmem:[%s1420_s14 + $0x60] sm:$0xff]  ;;  %v331_v28 = vld [vmem:[%s1420_s14 + $0x68] sm:$0xff]  ;;  %v332_v29 = vld [vmem:[%s1420_s14 + $0x70] sm:$0xff] }
  0x41   : > { %1034 = vmatmul.mubr.msk.f32.vlgmr.msra.gmra.mrb[0].mxu0 %vm345_vm0, %v319_v11  ;;  %1123 = vmatprep.subr.bf16.mxu1 %v1113_v19  ;;  %v333_v30 = vld [vmem:[%s1420_s14 + $0x78] sm:$0xff]  ;;  %s764_s14 = sld [smem:[#allocation2]]  ;;  %p1213_p10 = pnand %p1212_p6, %p1650_p9 }
  0x42   : > { %1036 = vmatprep.mubr.msk.f32.mxu0 %vm345_vm0, %v320_v13  ;;  %1108 = vmatpush3.bf16.msra.mxu0 %v1105_v12 }
  0x43   : > { %1110 = vmatprep.subr.bf16.mxu0 %v1109_v14  ;;  %p1214_p12 = pneg %p1213_p10 }
  0x44   : > { %1127 = vmatpush3.bf16.msra.mxu1 %v1113_v19 }
  0x45   : > { %1037 = vmatmul.mubr.msk.f32.gmra.mrb[2].mxu0 %vm345_vm0, %v321_v17  ;;  %1124 = vmatprep.subr.bf16.mxu1 %v1117_v33 }
  0x46   : > { %1039 = vmatprep.mubr.msk.f32.mxu0 %vm345_vm0, %v322_v18  ;;  %1112 = vmatpush3.bf16.msra.mxu0 %v1109_v14 }
  0x47   : > { %1114 = vmatprep.subr.bf16.mxu0 %v1113_v19 }
  0x48   : > { %1128 = vmatpush3.bf16.msra.mxu1 %v1117_v33 }
  0x49   : > { %1040 = vmatmul.mubr.msk.f32.gmra.mrb[4].mxu0 %vm345_vm0, %v323_v20  ;;  %v1506_v20 = vstv %s764_s14  ;;  %s1282_s14 = smov [#allocation6]  }
  0x4a   : > { %1042 = vmatprep.mubr.msk.f32.mxu0 %vm345_vm0, %v324_v21  ;;  %1116 = vmatpush3.bf16.msra.mxu0 %v1113_v19  ;;  %v766_v19 = vld [vmem:[%s1502_s10 + $0x8] sm:$0xff]  ;;  %v765_v21 = vld [vmem:[%s1502_s10] sm:$0xff]  ;;  %s1215_s30 = sshll.u32 %s1282_s14, 4  ;;  %s1216_s30 = int_to_ptr.vmem [resolvable:$false] %s1215_s30 }
  0x4b   : > { %1118 = vmatprep.subr.bf16.mxu0 %v1117_v33  ;;  %s1217_s9 = scalar_lea.vmem %s1216_s30, 4096  ;;  %p1218_p2 = scmp.lt.s32.totalorder %s1585_s21, %s1216_s30 }
  0x4c   : > { %p1219_p3 = scmp.lt.s32.totalorder %s1217_s9, %s1211_s25 }
  0x4d   : > { %1043 = vmatmul.mubr.msk.f32.gmra.mrb[6].mxu0 %vm345_vm0, %v325_v22  ;;  %v1512_v22 = vld [vmem:[%s1638_s6] ss:$0 sm:$0xff] }
  0x4e   : > { %1045 = vmatprep.mubr.msk.f32.mxu0 %vm345_vm0, %v326_v23  ;;  %1120 = vmatpush3.bf16.msra.mxu0 %v1117_v33  ;;  %v783_v23 = vmul.f32 %v1506_v20, %v766_v19  ;;  %p1220_p4 = por %p1219_p3, %p1218_p2 }
  0x50   : > { %p1221_p7 = pnand %p1220_p4, %p1214_p12 }
  0x51   : > { %1046 = vmatmul.mubr.msk.f32.gmra.mrb[8].mxu0 %vm345_vm0, %v327_v24 }
  0x52   : > { %1048 = vmatprep.mubr.msk.f32.mxu0 %vm345_vm0, %v328_v25  ;;  %v782_v25 = vmul.f32 %v1506_v20, %v765_v21 }
  0x55   : > { %1049 = vmatmul.mubr.msk.f32.gmra.mrb[10].mxu0 %vm345_vm0, %v329_v26  ;;  %v768_v26 = vld [vmem:[%s1502_s10 + $0x18] sm:$0xff] }
  0x56   : > { %1051 = vmatprep.mubr.msk.f32.mxu0 %vm345_vm0, %v330_v27  ;;  %v785_v32 = vmul.f32 %v1506_v20, %v768_v26 }
  0x59   : > { %1052 = vmatmul.mubr.msk.f32.gmra.mrb[12].mxu0 %vm345_vm0, %v331_v28 }
  0x5a   : > { %1054 = vmatprep.mubr.msk.f32.mxu0 %vm345_vm0, %v332_v29  ;;  %v767_v29 = vld [vmem:[%s1502_s10 + $0x10] sm:$0xff] }
  0x5d   : > { %1055 = vmatmul.mubr.msk.f32.gmra.mrb[14].mxu0 %vm345_vm0, %v333_v30 }
 0x114   : > { %v1035_v35 = vpop.f32.mrb[0].mxu0 }
 0x115   : > { %v466_v36 = vadd.f32 %v1035_v35, %v941_v34  ;;  %v460_v37 = vpop.f32.mrb[1].mxu0  ;;  %v784_v35 = vmul.f32 %v1506_v20, %v767_v29 }
 0x116   : > { %v461_v38 = vadd.f32 %v941_v34, %v460_v37 }
 0x117   : > { %v540_v41 = vmax.f32 %v466_v36, 0.0  ;;  %v770_v36 = vld [vmem:[%s1502_s10 + $0x28] sm:$0xff] }
 0x118   : > { %v539_v39 = vmax.f32 %v461_v38, 0.0  ;;  %v1038_v40 = vpop.f32.mrb[2].mxu0 }
 0x119   : > { %v476_v42 = vadd.f32 %v1038_v40, %v941_v34  ;;  %v470_v43 = vpop.f32.mrb[3].mxu0 }
 0x11a   : > { %v471_v44 = vadd.f32 %v941_v34, %v470_v43  ;;  %1073 = vmatprep.mubr.msk.f32.mxu0 %vm570_vm1, %v539_v39  ;;  %v769_v39 = vld [vmem:[%s1502_s10 + $0x20] sm:$0xff] }
 0x11b   : > { %1074 = vmatmul.mubr.msk.f32.vlgmr.msra.gmra.mrb[16].mxu0 %vm570_vm1, %v540_v41  ;;  %v542_v47 = vmax.f32 %v476_v42, 0.0  ;;  %v787_v42 = vmul.f32 %v1506_v20, %v770_v36 }
 0x11c   : > { %v541_v45 = vmax.f32 %v471_v44, 0.0  ;;  %v1041_v46 = vpop.f32.mrb[4].mxu0 }
 0x11d   : > { %v486_v48 = vadd.f32 %v1041_v46, %v941_v34  ;;  %v480_v49 = vpop.f32.mrb[5].mxu0  ;;  %v772_v46 = vld [vmem:[%s1502_s10 + $0x38] sm:$0xff] }
 0x11e   : > { %v481_v50 = vadd.f32 %v941_v34, %v480_v49  ;;  %1076 = vmatprep.mubr.msk.f32.mxu1 %vm570_vm1, %v541_v45  ;;  %v786_v45 = vmul.f32 %v1506_v20, %v769_v39  ;;  %v771_v49 = vld [vmem:[%s1502_s10 + $0x30] sm:$0xff] }
 0x11f   : > { %1077 = vmatmul.mubr.msk.f32.vlgmr.msra.gmra.mrb[0].mxu1 %vm570_vm1, %v542_v47  ;;  %v544_v53 = vmax.f32 %v486_v48, 0.0 }
 0x120   : > { %v543_v51 = vmax.f32 %v481_v50, 0.0  ;;  %v1044_v52 = vpop.f32.mrb[6].mxu0 }
 0x121   : > { %v496_v54 = vadd.f32 %v1044_v52, %v941_v34  ;;  %v490_v55 = vpop.f32.mrb[7].mxu0  ;;  %v789_v52 = vmul.f32 %v1506_v20, %v772_v46 }
 0x122   : > { %v491_v56 = vadd.f32 %v941_v34, %v490_v55  ;;  %1079 = vmatprep.mubr.msk.f32.mxu1 %vm570_vm1, %v543_v51  ;;  %v788_v55 = vmul.f32 %v1506_v20, %v771_v49 }
 0x123   : > { %1080 = vmatmul.mubr.msk.f32.gmra.mrb[2].mxu1 %vm570_vm1, %v544_v53  ;;  %v546_v59 = vmax.f32 %v496_v54, 0.0 }
 0x124   : > { %v545_v57 = vmax.f32 %v491_v56, 0.0  ;;  %v1047_v58 = vpop.f32.mrb[8].mxu0  ;;  %v774_v56 = vld [vmem:[%s1502_s10 + $0x48] sm:$0xff] }
 0x125   : > { %v506_v60 = vadd.f32 %v1047_v58, %v941_v34  ;;  %v500_v61 = vpop.f32.mrb[9].mxu0 }
 0x126   : > { %v501_v62 = vadd.f32 %v941_v34, %v500_v61  ;;  %1082 = vmatprep.mubr.msk.f32.mxu1 %vm570_vm1, %v545_v57 }
 0x127   : > { %1083 = vmatmul.mubr.msk.f32.gmra.mrb[4].mxu1 %vm570_vm1, %v546_v59  ;;  %v548_v1 = vmax.f32 %v506_v60, 0.0  ;;  %v773_v59 = vld [vmem:[%s1502_s10 + $0x40] sm:$0xff] }
 0x128   : > { %v547_v63 = vmax.f32 %v501_v62, 0.0  ;;  %v1050_v0 = vpop.f32.mrb[10].mxu0  ;;  %v791_v62 = vmul.f32 %v1506_v20, %v774_v56 }
 0x129   : > { %v516_v2 = vadd.f32 %v1050_v0, %v941_v34  ;;  %v510_v3 = vpop.f32.mrb[11].mxu0 }
 0x12a   : > { %v511_v4 = vadd.f32 %v941_v34, %v510_v3  ;;  %1085 = vmatprep.mubr.msk.f32.mxu1 %vm570_vm1, %v547_v63 }
 0x12b   : > { %1086 = vmatmul.mubr.msk.f32.gmra.mrb[6].mxu1 %vm570_vm1, %v548_v1  ;;  %v550_v7 = vmax.f32 %v516_v2, 0.0  ;;  %v790_v1 = vmul.f32 %v1506_v20, %v773_v59  ;;  %v776_v2 = vld [vmem:[%s1502_s10 + $0x58] sm:$0xff] }
 0x12c   : > { %v549_v5 = vmax.f32 %v511_v4, 0.0  ;;  %v1053_v6 = vpop.f32.mrb[12].mxu0 }
 0x12d   : > { %v526_v8 = vadd.f32 %v1053_v6, %v941_v34  ;;  %v520_v9 = vpop.f32.mrb[13].mxu0 }
 0x12e   : > { %v521_v10 = vadd.f32 %v941_v34, %v520_v9  ;;  %1088 = vmatprep.mubr.msk.f32.mxu1 %vm570_vm1, %v549_v5  ;;  %v775_v5 = vld [vmem:[%s1502_s10 + $0x50] sm:$0xff] }
 0x12f   : > { %1089 = vmatmul.mubr.msk.f32.gmra.mrb[8].mxu1 %vm570_vm1, %v550_v7  ;;  %v552_v13 = vmax.f32 %v526_v8, 0.0  ;;  %v793_v8 = vmul.f32 %v1506_v20, %v776_v2 }
 0x130   : > { %v551_v11 = vmax.f32 %v521_v10, 0.0  ;;  %v1056_v12 = vpop.f32.mrb[14].mxu0 }
 0x131   : > { %v536_v14 = vadd.f32 %v1056_v12, %v941_v34  ;;  %v530_v15 = vpop.f32.mrb[15].mxu0  ;;  %v778_v12 = vld [vmem:[%s1502_s10 + $0x68] sm:$0xff] }
 0x132   : > { %v531_v16 = vadd.f32 %v941_v34, %v530_v15  ;;  %1091 = vmatprep.mubr.msk.f32.mxu1 %vm570_vm1, %v551_v11  ;;  %v792_v11 = vmul.f32 %v1506_v20, %v775_v5  ;;  %v777_v15 = vld [vmem:[%s1502_s10 + $0x60] sm:$0xff] }
 0x133   : > { %1092 = vmatmul.mubr.msk.f32.gmra.mrb[10].mxu1 %vm570_vm1, %v552_v13  ;;  %v554_v18 = vmax.f32 %v536_v14, 0.0 }
 0x134   : > { %v553_v17 = vmax.f32 %v531_v16, 0.0 }
 0x136   : > { %1094 = vmatprep.mubr.msk.f32.mxu1 %vm570_vm1, %v553_v17 }
 0x137   : > { %1095 = vmatmul.mubr.msk.f32.gmra.mrb[12].mxu1 %vm570_vm1, %v554_v18  ;;  %v795_v18 = vmul.f32 %v1506_v20, %v778_v12 }
 0x1ee   : > { %v1075_v24 = vpop.f32.mrb[16].mxu0 }
 0x1ef   : > { %v691_v27 = vadd.f32 %v1075_v24, %v1512_v22  ;;  %v685_v28 = vpop.f32.mrb[17].mxu0  ;;  %v780_v24 = vld [vmem:[%s1502_s10 + $0x78] sm:$0xff] }
 0x1f0   : > { %v686_v30 = vadd.f32 %v1512_v22, %v685_v28 }
 0x1f1   : > { %v799_v31 = vadd.f32 %v783_v23, %v691_v27  ;;  %v794_v23 = vmul.f32 %v1506_v20, %v777_v15  ;;  %v779_v27 = vld [vmem:[%s1502_s10 + $0x70] sm:$0xff] }
 0x1f2   : > { %v798_v33 = vadd.f32 %v782_v25, %v686_v30  ;;  %v1078_v34 = vpop.f32.mrb[0].mxu1  ;;  %v797_v30 = vmul.f32 %v1506_v20, %v780_v24 }
 0x1f3   : > { %815 = vst [vmem:[%s1525_s17 + $0x8] sm:$0xff] %v799_v31  ;;  %v701_v37 = vadd.f32 %v1078_v34, %v1512_v22  ;;  %v695_v38 = vpop.f32.mrb[1].mxu1 }
 0x1f4   : > { %814 = vst [vmem:[%s1525_s17] sm:$0xff] %v798_v33  ;;  %v696_v40 = vadd.f32 %v1512_v22, %v695_v38  ;;  %v796_v33 = vmul.f32 %v1506_v20, %v779_v27 }
 0x1f5   : > { %v801_v41 = vadd.f32 %v785_v32, %v701_v37 }
 0x1f6   : > { %v800_v43 = vadd.f32 %v784_v35, %v696_v40  ;;  %v1081_v44 = vpop.f32.mrb[2].mxu1 }
 0x1f7   : > { %817 = vst [vmem:[%s1525_s17 + $0x18] sm:$0xff] %v801_v41  ;;  %v711_v47 = vadd.f32 %v1081_v44, %v1512_v22  ;;  %v705_v48 = vpop.f32.mrb[3].mxu1 }
 0x1f8   : > { %816 = vst [vmem:[%s1525_s17 + $0x10] sm:$0xff] %v800_v43  ;;  %v706_v50 = vadd.f32 %v1512_v22, %v705_v48 }
 0x1f9   : > { %v803_v51 = vadd.f32 %v787_v42, %v711_v47 }
 0x1fa   : > { %v802_v53 = vadd.f32 %v786_v45, %v706_v50  ;;  %v1084_v54 = vpop.f32.mrb[4].mxu1 }
 0x1fb   : > { %819 = vst [vmem:[%s1525_s17 + $0x28] sm:$0xff] %v803_v51  ;;  %v721_v57 = vadd.f32 %v1084_v54, %v1512_v22  ;;  %v715_v58 = vpop.f32.mrb[5].mxu1 }
 0x1fc   : > { %818 = vst [vmem:[%s1525_s17 + $0x20] sm:$0xff] %v802_v53  ;;  %v716_v60 = vadd.f32 %v1512_v22, %v715_v58 }
 0x1fd   : > { %v805_v61 = vadd.f32 %v789_v52, %v721_v57 }
 0x1fe   : > { %v804_v63 = vadd.f32 %v788_v55, %v716_v60  ;;  %v1087_v0 = vpop.f32.mrb[6].mxu1 }
 0x1ff   : > { %821 = vst [vmem:[%s1525_s17 + $0x38] sm:$0xff] %v805_v61  ;;  %v731_v3 = vadd.f32 %v1087_v0, %v1512_v22  ;;  %v725_v4 = vpop.f32.mrb[7].mxu1 }
 0x200   : > { %820 = vst [vmem:[%s1525_s17 + $0x30] sm:$0xff] %v804_v63  ;;  %v726_v6 = vadd.f32 %v1512_v22, %v725_v4 }
 0x201   : > { %v807_v7 = vadd.f32 %v791_v62, %v731_v3 }
 0x202   : > { %v806_v9 = vadd.f32 %v790_v1, %v726_v6  ;;  %v1090_v10 = vpop.f32.mrb[8].mxu1 }
 0x203   : > { %823 = vst [vmem:[%s1525_s17 + $0x48] sm:$0xff] %v807_v7  ;;  %v741_v13 = vadd.f32 %v1090_v10, %v1512_v22  ;;  %v735_v14 = vpop.f32.mrb[9].mxu1 }
 0x204   : > { %822 = vst [vmem:[%s1525_s17 + $0x40] sm:$0xff] %v806_v9  ;;  %v736_v16 = vadd.f32 %v1512_v22, %v735_v14 }
 0x205   : > { %v809_v17 = vadd.f32 %v793_v8, %v741_v13 }
 0x206   : > { %v808_v19 = vadd.f32 %v792_v11, %v736_v16  ;;  %v1093_v21 = vpop.f32.mrb[10].mxu1 }
 0x207   : > { %825 = vst [vmem:[%s1525_s17 + $0x58] sm:$0xff] %v809_v17  ;;  %v751_v25 = vadd.f32 %v1093_v21, %v1512_v22  ;;  %v745_v26 = vpop.f32.mrb[11].mxu1 }
 0x208   : > { %824 = vst [vmem:[%s1525_s17 + $0x50] sm:$0xff] %v808_v19  ;;  %v746_v28 = vadd.f32 %v1512_v22, %v745_v26 }
 0x209   : > { %v811_v29 = vadd.f32 %v795_v18, %v751_v25 }
 0x20a   : > { %v810_v31 = vadd.f32 %v794_v23, %v746_v28  ;;  %v1096_v32 = vpop.f32.mrb[12].mxu1 }
 0x20b   : > { %827 = vst [vmem:[%s1525_s17 + $0x68] sm:$0xff] %v811_v29  ;;  %v761_v34 = vadd.f32 %v1096_v32, %v1512_v22  ;;  %v755_v35 = vpop.f32.mrb[13].mxu1 }
 0x20c   : > { %826 = vst [vmem:[%s1525_s17 + $0x60] sm:$0xff] %v810_v31  ;;  %v756_v36 = vadd.f32 %v1512_v22, %v755_v35 }
 0x20d   : > { %v813_v37 = vadd.f32 %v797_v30, %v761_v34 }
 0x20e   : > { %v812_v20 = vadd.f32 %v796_v33, %v756_v36 }
 0x20f   : > { %829 = vst [vmem:[%s1525_s17 + $0x78] sm:$0xff] %v813_v37 }
 0x210   : > { %828 = vst [vmem:[%s1525_s17 + $0x70] sm:$0xff] %v812_v20 }
 0x211   : > { %1224 = shalt.err (!%p1221_p7)
}
 0x212   : > { %s1225_s10 = scalar_lea.hbm %s1583_s24, 2048  ;;  %s1229_s16 = scalar_lea.hbm %s1639_s7, 4096 }
 0x213   : > { %p1226_p8 = scmp.ne.s32.totalorder %s1583_s24, %s1225_s10  ;;  %p1230_p1 = scmp.lt.u32.totalorder %s1583_s24, %s1639_s7 }
 0x214   : > { %p1231_p0 = scmp.lt.u32.totalorder %s1229_s16, %s1225_s10  ;;  %p1233_p6 = scmp.lt.u32.totalorder %s1225_s10, %s1583_s24 }
 0x215   : > { %p1227_p11 = pnand %p1226_p8, %p1650_p9 }
 0x216   : > { %p1232_p5 = por %p1231_p0, %p1230_p1 }
 0x217   : > { %p1228_p13 = pneg %p1227_p11 }
 0x218   : > { %p1234_p10 = por %p1233_p6, %p1232_p5 }
 0x21a   : > { %p1235_p12 = pnand %p1234_p10, %p1228_p13 }
 0x21c   : > { %1238 = shalt.err (!%p1235_p12)
}
 0x21d   : > { %s1283_s20 = smov 128   ;;  %s1284_s22 = smov 8  }
 0x21e   : > { %1133 = dma.vmem_to_hbm [thread:$0]  (%p1650_p9), %s1585_s21, 2048, %s1583_s24, %s1591_s0, %s1283_s20, %s1283_s20, %s1284_s22  }
 0x21f PF: > { %p1145_p2 = scmp.ge.s32.totalorder %s1277_s29, 2  ;;  %s859_s23 = sand.u32 1, %s1265_s26  }
 0x220   : > { %p1651_p3 = scmp.ne.s32.totalorder %s1644_s13, 0  ;;  %s860_s25 = scalar_lea.sflag [#allocation5], %s859_s23 }
 0x222   : > { %p1140_p4 = pnand %p1145_p2, %p1651_p3 }
 0x224   : > { %1260 = dma.done.wait (!%p1140_p4), %s860_s25, 2048  }
 0x225   : > { %1262 = vsyncadd (!%p1140_p4), %s860_s25, 4294965248  ;;  %p19_p7 = scmp.ge.s32.totalorder %s1353_s8, 4   ;;  %s1652_s26 = smov %s1269_s27 }
 0x226   : > { %s1653_s27 = smov %s1273_s28  ;;  %s1654_s28 = smov %s1364_s11 }
 0x227   : > { %s1655_s29 = smov %s1353_s8  ;;  %21 = sbr.rel (!%p19_p7) target bundleno = 6 (0x6), region = 91 }
 0x22e   :  { %865 = vsyncpa [#allocation4], 1 }
 0x22f   :  { %867 = vsyncpa [#allocation4 + $0x1], 1 }
 0x230   :  { %868 = vsyncpa [#allocation5], 1 }
 0x231   :  { %870 = vsyncpa [#allocation5 + $0x1], 1 }

</bundles_post_ra>
